<compile_context>
chip_gen: v7x
topology: tpu7x:2x2x1
jax: 0.10.0
libtpu: 0.0.40
codegen_flags: <defaults>
</compile_context>

<pallas_src>
import numpy as np
import jax
import jax.numpy as jnp
from jax.experimental import pallas as pl
from jax.experimental.pallas import tpu as pltpu

# ----------------------------- configuration (small synthetic sizes) ----------
B = 2
C_IN = 3
H = W = 32
PATCH = 4
HP, WP = H // PATCH, W // PATCH          # low-res mask size (8, 8)
P = HP * WP                              # 64 patches / low-res pixels
CP = C_IN * PATCH * PATCH                # 48 patch features
D = 32                                   # hidden dim of synthetic backbone/head
NUM_QUERIES = 8
NUM_PART_QUERIES = 4
NUM_TEXT_QUERIES = 4
Q_TOTAL = NUM_QUERIES + NUM_PART_QUERIES + NUM_TEXT_QUERIES   # 16
NUM_CLASSES = 6                          # sem_seg_head.num_classes; logits have K+1
PIXEL_MEAN = (123.675, 116.28, 103.53)
PIXEL_STD = (58.395, 57.12, 57.375)

_VMEM = pl.BlockSpec(memory_space=pltpu.MemorySpace.VMEM)


# ----------------------------- Pallas kernels ---------------------------------
def _class_head_kernel(q_ref, w_ref, b_ref, p_ref):
    # q: (Q, D), w: (D, K+1), b: (1, K+1) -> p: (Q, K)  (softmax, drop no-object)
    logits = (
        jnp.dot(q_ref[...], w_ref[...], preferred_element_type=jnp.float32)
        + b_ref[...]
    )
    m = jnp.max(logits, axis=-1, keepdims=True)
    e = jnp.exp(logits - m)
    p = e / jnp.sum(e, axis=-1, keepdims=True)
    p_ref[...] = p[:, :-1]


def _fused_head_kernel(patches_ref, wf_ref, bf_ref, q_ref, p_ref, u_ref, o_ref):
    # Per-batch block:
    #   patches: (1, P, CP)  raw patch pixels (normalization folded into wf/bf)
    #   wf: (CP, D), bf: (1, D)  fused (norm + patch-conv + pixel-embed) weights
    #   q:  (Q, D) query embeddings
    #   p:  (Q, K) softmax class probs (no-object dropped, batch-independent)
    #   u:  (P, H*W) kron(Ah, Aw)^T bilinear upsample matrix
    #   o:  (1, K, H*W) semantic segmentation logits-weighted masks
    pix = (
        jnp.dot(patches_ref[0], wf_ref[...], preferred_element_type=jnp.float32)
        + bf_ref[...]
    )                                                              # (P, D)
    # mask logits: contract hidden dim of q against hidden dim of pix (q @ pix^T)
    mlog = jax.lax.dot_general(
        q_ref[...], pix, (((1,), (1,)), ((), ())),
        preferred_element_type=jnp.float32,
    )                                                              # (Q, P)
    # bilinear upsample (Ah @ m @ Aw^T) as one matmul against kron(Ah, Aw)^T
    up = jnp.dot(mlog, u_ref[...], preferred_element_type=jnp.float32)  # (Q, H*W)
    sig = jax.nn.sigmoid(up)
    # semantic inference: einsum('qc,qhw->chw') == p^T @ sig (contract queries)
    o_ref[0] = jax.lax.dot_general(
        p_ref[...], sig, (((0,), (0,)), ((), ())),
        preferred_element_type=jnp.float32,
    )                                                              # (K, H*W)


# ----------------------------- wrappers ----------------------------------------
def class_head_probs(q, w_cls, b_cls):
    Q, _ = q.shape
    K1 = w_cls.shape[1]
    return pl.pallas_call(
        _class_head_kernel,
        out_shape=jax.ShapeDtypeStruct((Q, K1 - 1), jnp.float32),
        in_specs=[_VMEM, _VMEM, _VMEM],
        out_specs=_VMEM,
    )(q.astype(jnp.float32), w_cls.astype(jnp.float32),
      b_cls.reshape(1, K1).astype(jnp.float32))


def fused_head(patches, w_f, b_f, q, p_cls, u_kron):
    Bx, Pp, Cp = patches.shape
    Q, Dd = q.shape
    K = p_cls.shape[1]
    HW = u_kron.shape[1]
    return pl.pallas_call(
        _fused_head_kernel,
        out_shape=jax.ShapeDtypeStruct((Bx, K, HW), jnp.float32),
        grid=(Bx,),
        in_specs=[
            pl.BlockSpec((1, Pp, Cp), lambda b: (b, 0, 0)),
            pl.BlockSpec((Cp, Dd), lambda b: (0, 0)),
            pl.BlockSpec((1, Dd), lambda b: (0, 0)),
            pl.BlockSpec((Q, Dd), lambda b: (0, 0)),
            pl.BlockSpec((Q, K), lambda b: (0, 0)),
            pl.BlockSpec((Pp, HW), lambda b: (0, 0)),
        ],
        out_specs=pl.BlockSpec((1, K, HW), lambda b: (b, 0, 0)),
        compiler_params=pltpu.CompilerParams(dimension_semantics=("parallel",)),
    )(patches, w_f, b_f, q, p_cls, u_kron)


def bilinear_matrix(out_size, in_size):
    # PyTorch F.interpolate(bilinear, align_corners=False) separable weights.
    scale = in_size / out_size
    A = np.zeros((out_size, in_size), np.float32)
    for i in range(out_size):
        src = max((i + 0.5) * scale - 0.5, 0.0)
        i0 = min(int(np.floor(src)), in_size - 1)
        i1 = min(i0 + 1, in_size - 1)
        w = src - i0
        A[i, i0] += 1.0 - w
        A[i, i1] += w
    return A


def kron_upsample_matrix(H_out, W_out, h_in, w_in):
    # up = Ah @ m @ Aw^T  <=>  up_flat = m_flat @ kron(Ah, Aw)^T
    Ah = bilinear_matrix(H_out, h_in)       # (H, h)
    Aw = bilinear_matrix(W_out, w_in)       # (W, w)
    return jnp.asarray(np.kron(Ah, Aw).T)   # (h*w, H*W)


# ----------------------------- full forward (inference branch) -----------------
def maskformer_plus_forward(image, params):
    f32 = jnp.float32
    # ---- fold normalization + patch conv + pixel-embed into one weight -------
    inv_std = (1.0 / params["pixel_std"]).astype(f32)                 # (C,)
    scale = jnp.repeat(inv_std, PATCH * PATCH)                        # (CP,)  [c, ph, pw]
    shift = jnp.repeat(params["pixel_mean"].astype(f32) * inv_std, PATCH * PATCH)
    w_scaled = scale[:, None] * params["w_patch"].astype(f32)         # (CP, D)
    b_scaled = params["b_patch"].astype(f32) - shift @ params["w_patch"].astype(f32)
    w_f = w_scaled @ params["w_pix"].astype(f32)                      # (CP, D)
    b_f = (b_scaled @ params["w_pix"].astype(f32)
           + params["b_pix"].astype(f32)).reshape(1, D)               # (1, D)

    # ---- patch extraction: 4x4 stride-4 "patch conv" operand (layout only) ----
    # images are already size-divisible (32 % size_divisibility == 0) -> no padding.
    x = image.astype(f32)
    patches = x.reshape(B, C_IN, HP, PATCH, WP, PATCH)
    patches = jnp.transpose(patches, (0, 2, 4, 1, 3, 5)).reshape(B, P, CP)

    # ---- batch-independent class head + softmax[..., :-1], computed once -----
    p_cls = class_head_probs(params["query_embed"], params["w_cls"], params["b_cls"])

    # ---- precomputed separable-bilinear Kronecker matrix ----------------------
    u_kron = kron_upsample_matrix(H, W, HP, WP)                       # (P, H*W)

    # ---- fused per-batch head (pix, mask logits, upsample, sigmoid, einsum) ---
    sem_seg = fused_head(
        patches, w_f, b_f, params["query_embed"].astype(f32), p_cls, u_kron
    )
    return sem_seg.reshape(B, NUM_CLASSES, H, W)


# ----------------------------- pure-JAX reference -------------------------------
def reference_forward(image, params):
    mean = params["pixel_mean"].reshape(1, C_IN, 1, 1)
    std = params["pixel_std"].reshape(1, C_IN, 1, 1)
    x = (image - mean) / std
    patches = x.reshape(B, C_IN, HP, PATCH, WP, PATCH)
    patches = jnp.transpose(patches, (0, 2, 4, 1, 3, 5)).reshape(B * P, CP)
    feats = patches @ params["w_patch"] + params["b_patch"]
    pix = feats @ params["w_pix"] + params["b_pix"]
    q = params["query_embed"]
    logits = q @ params["w_cls"] + params["b_cls"]
    logits = jnp.broadcast_to(logits[None], (B, Q_TOTAL, NUM_CLASSES + 1))
    masks = (q @ pix.T).reshape(Q_TOTAL, B, P)
    masks = jnp.transpose(masks, (1, 0, 2)).reshape(B, Q_TOTAL, HP, WP)
    Ah = jnp.asarray(bilinear_matrix(H, HP))
    Aw = jnp.asarray(bilinear_matrix(W, WP))
    up = jnp.einsum("Hh,bqhw,Ww->bqHW", Ah, masks, Aw)
    p = jax.nn.softmax(logits, axis=-1)[..., :-1]
    sig = jax.nn.sigmoid(up)
    return jnp.einsum("bqk,bqhw->bkhw", p, sig)


# ----------------------------- main ---------------------------------------------
if __name__ == "__main__":
    key = jax.random.PRNGKey(0)
    k_img, k1, k2, k3, k4, k5, k6, k7, k8 = jax.random.split(key, 9)

    image = jax.random.uniform(k_img, (B, C_IN, H, W), jnp.float32) * 255.0

    params = {
        "pixel_mean": jnp.asarray(PIXEL_MEAN, jnp.float32),
        "pixel_std": jnp.asarray(PIXEL_STD, jnp.float32),
        "w_patch": jax.random.normal(k1, (CP, D), jnp.float32) * 0.1,
        "b_patch": jax.random.normal(k2, (D,), jnp.float32) * 0.01,
        "w_pix": jax.random.normal(k3, (D, D), jnp.float32) * 0.1,
        "b_pix": jax.random.normal(k4, (D,), jnp.float32) * 0.01,
        "query_embed": jax.random.normal(k5, (Q_TOTAL, D), jnp.float32) * 0.1,
        "w_cls": jax.random.normal(k6, (D, NUM_CLASSES + 1), jnp.float32) * 0.1,
        "b_cls": jax.random.normal(k7, (NUM_CLASSES + 1,), jnp.float32) * 0.01,
    }

    fwd = jax.jit(maskformer_plus_forward)
    sem_seg = jax.block_until_ready(fwd(image, params))
    ref = jax.block_until_ready(jax.jit(reference_forward)(image, params))

    assert sem_seg.shape == (B, NUM_CLASSES, H, W), sem_seg.shape
    if not np.allclose(np.asarray(sem_seg), np.asarray(ref), rtol=1e-3, atol=1e-3):
        raise AssertionError("Pallas result does not match JAX reference")

    print("KERNEL_OK")
</pallas_src>

<mosaic_0001>
module attributes {stable_mosaic.version = 11 : i64} {
  func.func @_class_head_kernel(%arg0: memref<16x32xf32, #tpu.memory_space<vmem>>, %arg1: memref<32x7xf32, #tpu.memory_space<vmem>>, %arg2: memref<1x7xf32, #tpu.memory_space<vmem>>, %arg3: memref<16x6xf32, #tpu.memory_space<vmem>>) attributes {dimension_semantics = [], scalar_prefetch = 0 : i64, scratch_operands = 0 : i64, tpu.core_type = #tpu.core_type<tc>} {
    %c0 = arith.constant 0 : index
    %c0_0 = arith.constant 0 : index
    %0 = vector.load %arg0[%c0, %c0_0] : memref<16x32xf32, #tpu.memory_space<vmem>>, vector<16x32xf32>
    %c0_1 = arith.constant 0 : index
    %c0_2 = arith.constant 0 : index
    %1 = vector.load %arg1[%c0_1, %c0_2] : memref<32x7xf32, #tpu.memory_space<vmem>>, vector<32x7xf32>
    %cst = arith.constant dense<0.000000e+00> : vector<16x7xf32>
    %2 = tpu.matmul %0, %1, %cst {dimension_numbers = #tpu.dot_dimension_numbers<[1], [0], [0], [1], [0, 0, 1, 1], [], []>} : vector<16x32xf32>, vector<32x7xf32>, vector<16x7xf32> -> vector<16x7xf32>
    %c0_3 = arith.constant 0 : index
    %c0_4 = arith.constant 0 : index
    %3 = vector.load %arg2[%c0_3, %c0_4] : memref<1x7xf32, #tpu.memory_space<vmem>>, vector<1x7xf32>
    %4 = vector.broadcast %3 : vector<1x7xf32> to vector<16x7xf32>
    %5 = arith.addf %2, %4 : vector<16x7xf32>
    %cst_5 = arith.constant dense<0xFF800000> : vector<16xf32>
    %6 = vector.multi_reduction <maximumf>, %5, %cst_5 [1] : vector<16x7xf32> to vector<16xf32>
    %7 = vector.shape_cast %6 : vector<16xf32> to vector<16x1xf32>
    %8 = vector.broadcast %7 : vector<16x1xf32> to vector<16x7xf32>
    %9 = arith.subf %5, %8 : vector<16x7xf32>
    %10 = math.exp %9 : vector<16x7xf32>
    %cst_6 = arith.constant dense<0.000000e+00> : vector<16xf32>
    %11 = vector.multi_reduction <add>, %10, %cst_6 [1] : vector<16x7xf32> to vector<16xf32>
    %12 = vector.shape_cast %11 : vector<16xf32> to vector<16x1xf32>
    %13 = vector.broadcast %12 : vector<16x1xf32> to vector<16x7xf32>
    %14 = arith.divf %10, %13 : vector<16x7xf32>
    %15 = vector.extract_strided_slice %14 {offsets = [0, 0], sizes = [16, 6], strides = [1, 1]} : vector<16x7xf32> to vector<16x6xf32>
    %c0_7 = arith.constant 0 : index
    %c0_8 = arith.constant 0 : index
    %16 = vector.load %arg3[%c0_7, %c0_8] : memref<16x6xf32, #tpu.memory_space<vmem>>, vector<16x6xf32>
    tpu.vector_store %arg3[%c0_7, %c0_8], %15 {strides = array<i32>} : memref<16x6xf32, #tpu.memory_space<vmem>>, vector<16x6xf32>,
    return
  }
}

module attributes {stable_mosaic.version = 11 : i64} {
  func.func @_fused_head_kernel(%arg0: i32, %arg1: memref<1x64x48xf32, #tpu.memory_space<vmem>>, %arg2: memref<48x32xf32, #tpu.memory_space<vmem>>, %arg3: memref<1x32xf32, #tpu.memory_space<vmem>>, %arg4: memref<16x32xf32, #tpu.memory_space<vmem>>, %arg5: memref<16x6xf32, #tpu.memory_space<vmem>>, %arg6: memref<64x1024xf32, #tpu.memory_space<vmem>>, %arg7: memref<1x6x1024xf32, #tpu.memory_space<vmem>>) attributes {dimension_semantics = [#tpu.dimension_semantics<parallel>], iteration_bounds = array<i64: 2>, scalar_prefetch = 0 : i64, scratch_operands = 0 : i64, tpu.core_type = #tpu.core_type<tc>, window_params = [{transform_indices = @transform_0, window_bounds = array<i64: 1, 64, 48>}, {pipeline_mode = #tpu.pipeline_mode<synchronous>, transform_indices = @transform_1, window_bounds = array<i64: 48, 32>}, {pipeline_mode = #tpu.pipeline_mode<synchronous>, transform_indices = @transform_2, window_bounds = array<i64: 1, 32>}, {pipeline_mode = #tpu.pipeline_mode<synchronous>, transform_indices = @transform_3, window_bounds = array<i64: 16, 32>}, {pipeline_mode = #tpu.pipeline_mode<synchronous>, transform_indices = @transform_4, window_bounds = array<i64: 16, 6>}, {pipeline_mode = #tpu.pipeline_mode<synchronous>, transform_indices = @transform_5, window_bounds = array<i64: 64, 1024>}, {transform_indices = @transform_6, window_bounds = array<i64: 1, 6, 1024>}]} {
    %c0 = arith.constant 0 : index
    %c0_0 = arith.constant 0 : index
    %c0_1 = arith.constant 0 : index
    %0 = vector.load %arg1[%c0, %c0_0, %c0_1] : memref<1x64x48xf32, #tpu.memory_space<vmem>>, vector<1x64x48xf32>
    %1 = vector.shape_cast %0 : vector<1x64x48xf32> to vector<64x48xf32>
    %c0_2 = arith.constant 0 : index
    %c0_3 = arith.constant 0 : index
    %2 = vector.load %arg2[%c0_2, %c0_3] : memref<48x32xf32, #tpu.memory_space<vmem>>, vector<48x32xf32>
    %cst = arith.constant dense<0.000000e+00> : vector<64x32xf32>
    %3 = tpu.matmul %1, %2, %cst {dimension_numbers = #tpu.dot_dimension_numbers<[1], [0], [0], [1], [0, 0, 1, 1], [], []>} : vector<64x48xf32>, vector<48x32xf32>, vector<64x32xf32> -> vector<64x32xf32>
    %c0_4 = arith.constant 0 : index
    %c0_5 = arith.constant 0 : index
    %4 = vector.load %arg3[%c0_4, %c0_5] : memref<1x32xf32, #tpu.memory_space<vmem>>, vector<1x32xf32>
    %5 = vector.broadcast %4 : vector<1x32xf32> to vector<64x32xf32>
    %6 = arith.addf %3, %5 : vector<64x32xf32>
    %c0_6 = arith.constant 0 : index
    %c0_7 = arith.constant 0 : index
    %7 = vector.load %arg4[%c0_6, %c0_7] : memref<16x32xf32, #tpu.memory_space<vmem>>, vector<16x32xf32>
    %cst_8 = arith.constant dense<0.000000e+00> : vector<16x64xf32>
    %8 = tpu.matmul %7, %6, %cst_8 {dimension_numbers = #tpu.dot_dimension_numbers<[1], [1], [0], [0], [0, 0, 1, 0], [], []>} : vector<16x32xf32>, vector<64x32xf32>, vector<16x64xf32> -> vector<16x64xf32>
    %c0_9 = arith.constant 0 : index
    %c0_10 = arith.constant 0 : index
    %9 = vector.load %arg6[%c0_9, %c0_10] : memref<64x1024xf32, #tpu.memory_space<vmem>>, vector<64x1024xf32>
    %cst_11 = arith.constant dense<0.000000e+00> : vector<16x1024xf32>
    %10 = tpu.matmul %8, %9, %cst_11 {dimension_numbers = #tpu.dot_dimension_numbers<[1], [0], [0], [1], [0, 0, 1, 1], [], []>} : vector<16x64xf32>, vector<64x1024xf32>, vector<16x1024xf32> -> vector<16x1024xf32>
    %11 = arith.negf %10 : vector<16x1024xf32>
    %12 = math.exp %11 : vector<16x1024xf32>
    %cst_12 = arith.constant 1.000000e+00 : f32
    %13 = vector.broadcast %cst_12 : f32 to vector<16x1024xf32>
    %14 = arith.addf %13, %12 : vector<16x1024xf32>
    %15 = arith.divf %13, %14 : vector<16x1024xf32>
    %c0_13 = arith.constant 0 : index
    %c0_14 = arith.constant 0 : index
    %16 = vector.load %arg5[%c0_13, %c0_14] : memref<16x6xf32, #tpu.memory_space<vmem>>, vector<16x6xf32>
    %cst_15 = arith.constant dense<0.000000e+00> : vector<6x1024xf32>
    %17 = tpu.matmul %16, %15, %cst_15 {dimension_numbers = #tpu.dot_dimension_numbers<[0], [0], [1], [1], [0, 1, 1, 1], [], []>} : vector<16x6xf32>, vector<16x1024xf32>, vector<6x1024xf32> -> vector<6x1024xf32>
    %c0_16 = arith.constant 0 : index
    %c0_17 = arith.constant 0 : index
    %c0_18 = arith.constant 0 : index
    %18 = vector.load %arg7[%c0_16, %c0_17, %c0_18] : memref<1x6x1024xf32, #tpu.memory_space<vmem>>, vector<1x6x1024xf32>
    %19 = vector.shape_cast %18 : vector<1x6x1024xf32> to vector<6x1024xf32>
    %20 = vector.shape_cast %17 : vector<6x1024xf32> to vector<1x6x1024xf32>
    tpu.vector_store %arg7[%c0_16, %c0_17, %c0_18], %20 {strides = array<i32>} : memref<1x6x1024xf32, #tpu.memory_space<vmem>>, vector<1x6x1024xf32>,
    return
  }
  func.func @transform_0(%arg0: i32) -> (i32, i32, i32) {
    %c0_i32 = arith.constant 0 : i32
    %c0_i32_0 = arith.constant 0 : i32
    %c0_i32_1 = arith.constant 0 : i32
    return %arg0, %c0_i32, %c0_i32_0 : i32, i32, i32
  }
  func.func @transform_1(%arg0: i32) -> (i32, i32) {
    %c0_i32 = arith.constant 0 : i32
    %c0_i32_0 = arith.constant 0 : i32
    %c0_i32_1 = arith.constant 0 : i32
    return %c0_i32, %c0_i32_0 : i32, i32
  }
  func.func @transform_2(%arg0: i32) -> (i32, i32) {
    %c0_i32 = arith.constant 0 : i32
    %c0_i32_0 = arith.constant 0 : i32
    %c0_i32_1 = arith.constant 0 : i32
    return %c0_i32, %c0_i32_0 : i32, i32
  }
  func.func @transform_3(%arg0: i32) -> (i32, i32) {
    %c0_i32 = arith.constant 0 : i32
    %c0_i32_0 = arith.constant 0 : i32
    %c0_i32_1 = arith.constant 0 : i32
    return %c0_i32, %c0_i32_0 : i32, i32
  }
  func.func @transform_4(%arg0: i32) -> (i32, i32) {
    %c0_i32 = arith.constant 0 : i32
    %c0_i32_0 = arith.constant 0 : i32
    %c0_i32_1 = arith.constant 0 : i32
    return %c0_i32, %c0_i32_0 : i32, i32
  }
  func.func @transform_5(%arg0: i32) -> (i32, i32) {
    %c0_i32 = arith.constant 0 : i32
    %c0_i32_0 = arith.constant 0 : i32
    %c0_i32_1 = arith.constant 0 : i32
    return %c0_i32, %c0_i32_0 : i32, i32
  }
  func.func @transform_6(%arg0: i32) -> (i32, i32, i32) {
    %c0_i32 = arith.constant 0 : i32
    %c0_i32_0 = arith.constant 0 : i32
    %c0_i32_1 = arith.constant 0 : i32
    return %arg0, %c0_i32, %c0_i32_0 : i32, i32, i32
  }
}

</mosaic_0001>

<bundles_post_ra>
// kernel: mul.7
= control target key start
LH: loop header
LB: loop body
LE: loop exit
PB: predicated region body
PF: predicated region fallthrough
CT: control target
= control target key end

     0   :  { %vm7_vm0 = vcmask 130048   ;;  %s30_s8 = smov 16   ;;  %vm13_vm1 = vcmask 392448   ;;  %vm19_vm2 = vcmask 261248   ;;  %s47_s0 = inlined_call_operand.vmem [shape: f32[3,16], index: 0, kind: input, shape index: {}]   ;;  %s48_s1 = inlined_call_operand.vmem [shape: f32[48], index: 1, kind: output, shape index: {}]  }
   0x1   :  { %v4_v0 = vld [vmem:[%s47_s0] sm:$0xf]  ;;  %s29_s0 = smov 32  }
   0x2   :  { %5 = vst [vmem:[#allocation1] sm:$0xf] %v4_v0 }
   0x9   :  { %v10_v1 = vld [vmem:[#allocation1 + $0x2] sm:$0x1]   ;;  %v6_v2 = vld [vmem:[#allocation1] sm:$0x1]   ;;  %v16_v3 = vld [vmem:[#allocation1 + $0x1] sm:$0x1]  }
   0xa   :  { %11 = vrot.lane.b32.xlu0 %v10_v1, %s29_s0  ;;  %8 = vst.msk [vmem:[#allocation0] sm:$0x1] %vm7_vm0, %v6_v2  }
   0xe   :  { %17 = vrot.lane.b32.xlu0 %v16_v3, %s30_s8 }
  0x7c   :  { %v12_v4 = vpop.permute.xlu0 %11  }
  0x7d   :  { %14 = vst.msk [vmem:[#allocation0] sm:$0x1] %vm13_vm1, %v12_v4  }
  0x80   :  { %v18_v5 = vpop.permute.xlu0 %17  }
  0x81   :  { %20 = vst.msk [vmem:[#allocation0] sm:$0x1] %vm19_vm2, %v18_v5  }
  0x88   :  { %v24_v6 = vld [vmem:[#allocation0] sm:$0x1] }
  0x89   :  { %26 = vst [vmem:[%s48_s1] sm:$0x1] %v24_v6 }

// kernel: sub.1
= control target key start
LH: loop header
LB: loop body
LE: loop exit
PB: predicated region body
PF: predicated region fallthrough
CT: control target
= control target key end

     0   :  { %s34_s0 = inlined_call_operand.vmem [shape: f32[32], index: 0, kind: input, shape index: {}]   ;;  %s35_s1 = inlined_call_operand.vmem [shape: f32[32], index: 1, kind: input, shape index: {}]   ;;  %s36_s2 = inlined_call_operand.vmem [shape: f32[32], index: 2, kind: output, shape index: {}]  }
   0x1   :  { %v3_v0 = vld [vmem:[%s34_s0] sm:$0x1] }
   0x2   :  { %v4_v1 = vld [vmem:[%s35_s1] sm:$0x1] }
   0x3   :  { %v7_v2 = vsub.f32 %v3_v0, %v4_v1 }
   0x5   :  { %9 = vst [vmem:[%s36_s2] sm:$0x1] %v7_v2 }

// kernel: maskformer_plus_forward.2
= control target key start
LH: loop header
LB: loop body
LE: loop exit
PB: predicated region body
PF: predicated region fallthrough
CT: control target
= control target key end

     0   :  { %vm27_vm0 = vcmask 261120   ;;  %vm109_vm1 = vcmask 56320   ;;  %vm132_vm2 = vcmask 48128   ;;  %s226_s1 = inlined_call_operand.vmem [shape: f32[32,7], index: 1, kind: input, shape index: {}]   ;;  %s227_s0 = inlined_call_operand.vmem [shape: f32[16,32], index: 0, kind: input, shape index: {}]   ;;  %s228_s2 = inlined_call_operand.vmem [shape: f32[1,7], index: 2, kind: input, shape index: {}]   ;;  %s229_s3 = inlined_call_operand.vmem [shape: f32[16,6], index: 3, kind: output, shape index: {}]  }
   0x1   :  { %v16_v0 = vld [vmem:[%s226_s1] sm:$0xff]  ;;  %v17_v1 = vld [vmem:[%s226_s1 + $0x8] sm:$0xff]  ;;  %v18_v2 = vld [vmem:[%s226_s1 + $0x10] sm:$0xff] }
   0x2   :  { %v159_v3 = vpack.c.bf16 %v17_v1, %v16_v0  ;;  %v19_v4 = vld [vmem:[%s226_s1 + $0x18] sm:$0xff]  ;;  %v14_v5 = vld [vmem:[%s227_s0] sm:$0xff]  ;;  %v15_v7 = vld [vmem:[%s227_s0 + $0x8] sm:$0xff] }
   0x3   :  { %v163_v6 = vpack.c.bf16 %v19_v4, %v18_v2  ;;  %156 = vmatprep.mubr.msk.f32.mxu0 %vm27_vm0, %v14_v5  ;;  %v139_v8 = vld [vmem:[%s228_s2] ss:$0 sm:$0xff] }
   0x4   :  { %160 = vmatprep.subr.bf16.mxu0 %v159_v3 }
   0x5   :  { %162 = vmatpush3.bf16.msra.mxu0 %v159_v3 }
   0x6   :  { %164 = vmatprep.subr.bf16.mxu0 %v163_v6 }
   0x9   :  { %166 = vmatpush3.bf16.msra.mxu0 %v163_v6 }
   0xc   :  { %157 = vmatmul.mubr.msk.f32.vlgmr.msra.gmra.mrb[0].mxu0 %vm27_vm0, %v15_v7 }
  0xdf   :  { %v158_v9 = vpop.f32.mrb[0].mxu0 }
  0xe0   :  { %v100_v10 = vpop.f32.mrb[1].mxu0  ;;  %v106_v12 = vadd.f32 %v158_v9, %v139_v8 }
  0xe1   :  { %v101_v11 = vadd.f32 %v139_v8, %v100_v10 }
  0xe2   :  { %v113_v14 = vsel %vm109_vm1, %v106_v12, -inf }
  0xe3   :  { %v110_v13 = vsel %vm109_vm1, %v101_v11, -inf }
  0xe4   :  { %111 = vmax.xlane.f32.xlu0 %v110_v13 }
  0xe8   :  { %114 = vmax.xlane.f32.xlu0 %v113_v14 }
 0x171   :  { %v112_v15 = vpop.xlane.xlu0 %111 }
 0x172   :  { %v116_v16 = vsub.f32 %v101_v11, %v112_v15 }
 0x174   :  { %v118_v17 = vmul.f32 1.442695, %v116_v16 }
 0x175   :  { %v115_v18 = vpop.xlane.xlu0 %114 }
 0x176   :  { %167 = vpow2.f32 %v118_v17  ;;  %v117_v19 = vsub.f32 %v106_v12, %v115_v18 }
 0x178   :  { %v120_v20 = vmul.f32 1.442695, %v117_v19 }
 0x17a   :  { %169 = vpow2.f32 %v120_v20 }
 0x180   :  { %v168_v21 = vpop.eup %167 }
 0x181   :  { %v122_v22 = vsel %vm109_vm1, %v168_v21, 0.0 }
 0x182   :  { %123 = vadd.xlane.f32.xlu1 %v122_v22 }
 0x184   :  { %v170_v23 = vpop.eup %169 }
 0x185   :  { %v125_v24 = vsel %vm109_vm1, %v170_v23, 0.0 }
 0x186   :  { %126 = vadd.xlane.f32.xlu1 %v125_v24 }
 0x20f   :  { %v124_v25 = vpop.xlane.xlu1 %123 }
 0x210   :  { %171 = vrcp.f32 %v124_v25 }
 0x213   :  { %v127_v26 = vpop.xlane.xlu1 %126 }
 0x214   :  { %173 = vrcp.f32 %v127_v26 }
 0x21a   :  { %v172_v27 = vpop.eup %171 }
 0x21b   :  { %v129_v28 = vmul.f32 %v172_v27, %v168_v21 }
 0x21d   :  { %133 = vst.msk [vmem:[%s229_s3] sm:$0xff] %vm132_vm2, %v129_v28 }
 0x21e   :  { %v174_v29 = vpop.eup %173 }
 0x21f   :  { %v131_v30 = vmul.f32 %v174_v29, %v170_v23 }
 0x221   :  { %134 = vst.msk [vmem:[%s229_s3 + $0x8] sm:$0xff] %vm132_vm2, %v131_v30 }

// kernel: maskformer_plus_forward.3
= control target key start
LH: loop header
LB: loop body
LE: loop exit
PB: predicated region body
PF: predicated region fallthrough
CT: control target
= control target key end

     0   :  { %s1731_s21 = smov 0   ;;  %s2051_s0 = inlined_call_operand.vmem [shape: f32[2,64,48], index: 0, kind: input, shape index: {}]   ;;  %s2052_s1 = inlined_call_operand.vmem [shape: f32[48,32], index: 1, kind: input, shape index: {}]   ;;  %s2053_s2 = inlined_call_operand.vmem [shape: f32[1,32], index: 2, kind: input, shape index: {}]   ;;  %s2054_s3 = inlined_call_operand.vmem [shape: f32[16,32], index: 3, kind: input, shape index: {}]   ;;  %s2055_s4 = inlined_call_operand.vmem [shape: f32[16,6], index: 4, kind: input, shape index: {}]   ;;  %s2056_s5 = inlined_call_operand.vmem [shape: f32[64,1024], index: 5, kind: input, shape index: {}]   ;;  %s2057_s6 = inlined_call_operand.vmem [shape: f32[2,6,1024], index: 6, kind: output, shape index: {}]  }
   0x1 LB: > { %s1371_s22 = sadd.s32 4294967295, %s1693_s21   ;;  %p1375_p0 = scmp.ge.s32.totalorder %s1693_s21, 1  ;;  %s1693_s21 = sphi %s1731_s21, %s16_s21  }
   0x2   : > { %p212_p1 = scmp.lt.s32.totalorder %s1693_s21, 3 }
   0x4   : > { %p213_p2 = pnand %p1375_p0, %p212_p1 }
   0x5   : > { %v260_v0 = vld [vmem:[%s2052_s1] sm:$0xff] (!%p213_p2)  ;;  %v261_v1 = vld [vmem:[%s2052_s1 + $0x8] sm:$0xff] (!%p213_p2)  ;;  %v262_v2 = vld [vmem:[%s2052_s1 + $0x10] sm:$0xff] (!%p213_p2)  ;;  %p242_p3 = scmp.lt.s32.totalorder (!%p213_p2), %s1371_s22, 1  ;;  %vm273_vm0 = vcmask (!%p213_p2), 392192   ;;  %vm405_vm1 = vcmask (!%p213_p2), 261120  }
   0x6   : > { %216 = sbr.rel (%p213_p2) target bundleno = 979 (0x3d3), region = 44  ;;  %v1498_v3 = vpack.c.bf16 (!%p213_p2), %v261_v1, %v260_v0  ;;  %v263_v4 = vld [vmem:[%s2052_s1 + $0x18] sm:$0xff] (!%p213_p2)  ;;  %v264_v6 = vld [vmem:[%s2052_s1 + $0x20] sm:$0xff] (!%p213_p2)  ;;  %v265_v7 = vld [vmem:[%s2052_s1 + $0x28] sm:$0xff] (!%p213_p2)  ;;  %vm575_vm3 = vcmask (!%p213_p2), 523264   ;;  %vm1020_vm4 = vcmask (!%p213_p2), 130048  }
   0x7   : > { %v1502_v5 = vpack.c.bf16 (!%p213_p2), %v263_v4, %v262_v2  ;;  %v1506_v8 = vpack.c.bf16 (!%p213_p2), %v265_v7, %v264_v6  ;;  %v403_v17 = vld [vmem:[%s2054_s3] sm:$0xff] (!%p213_p2)  ;;  %v512_v18 = vld [vmem:[%s2056_s5 + $0x8] sm:$0xff] (!%p213_p2)  ;;  %vm1830_vm2 = vmpackc.low (!%p213_p2), %vm405_vm1, %vm405_vm1 }
   0x8   : > { %1499 = vmatprep.subr.bf16.mxu0 (!%p213_p2), %v1498_v3  ;;  %1495 = vmatprep.mubr.msk.f32.mxu1 (!%p213_p2), %vm405_vm1, %v403_v17  ;;  %v520_v19 = vld [vmem:[%s2056_s5 + $0x48] sm:$0xff] (!%p213_p2)  ;;  %v511_v20 = vld [vmem:[%s2056_s5] sm:$0xff] (!%p213_p2)  ;;  %v562_v47 = vld [vmem:[%s2056_s5 + $0x198] sm:$0xff] (!%p213_p2) }
   0x9   : > { %1501 = vmatpush3.bf16.msra.mxu0 (!%p213_p2), %v1498_v3  ;;  %v1534_v21 = vpack.c.bf16 (!%p213_p2), %v520_v19, %v512_v18  ;;  %v519_v22 = vld [vmem:[%s2056_s5 + $0x40] sm:$0xff] (!%p213_p2)  ;;  %v528_v24 = vld [vmem:[%s2056_s5 + $0x88] sm:$0xff] (!%p213_p2) }
   0xa   : > { %1503 = vmatprep.subr.bf16.mxu0 (!%p213_p2), %v1502_v5  ;;  %v1536_v23 = vpack.c.bf16 (!%p213_p2), %v519_v22, %v511_v20  ;;  %v536_v25 = vld [vmem:[%s2056_s5 + $0xc8] sm:$0xff] (!%p213_p2)  ;;  %v527_v26 = vld [vmem:[%s2056_s5 + $0x80] sm:$0xff] (!%p213_p2) }
   0xb   : > { %v535_v27 = vld [vmem:[%s2056_s5 + $0xc0] sm:$0xff] (!%p213_p2)  ;;  %v1538_v28 = vpack.c.bf16 (!%p213_p2), %v536_v25, %v528_v24  ;;  %v544_v30 = vld [vmem:[%s2056_s5 + $0x108] sm:$0xff] (!%p213_p2)  ;;  %v514_v25 = vld [vmem:[%s2056_s5 + $0x18] sm:$0xff] (!%p213_p2) }
   0xc   : > { %v1540_v29 = vpack.c.bf16 (!%p213_p2), %v535_v27, %v527_v26  ;;  %v552_v31 = vld [vmem:[%s2056_s5 + $0x148] sm:$0xff] (!%p213_p2)  ;;  %v543_v33 = vld [vmem:[%s2056_s5 + $0x100] sm:$0xff] (!%p213_p2)  ;;  %v522_v26 = vld [vmem:[%s2056_s5 + $0x58] sm:$0xff] (!%p213_p2) }
   0xd   : > { %s2061_s22 = smov (!%p242_p3, %s1371_s22), 1  ;;  %1505 = vmatpush3.bf16.msra.mxu0 %v1502_v5  ;;  %v1542_v32 = vpack.c.bf16 %v552_v31, %v544_v30  ;;  %v551_v34 = vld [vmem:[%s2056_s5 + $0x140] sm:$0xff]  ;;  %v560_v36 = vld [vmem:[%s2056_s5 + $0x188] sm:$0xff]  ;;  %v1550_v27 = vpack.c.bf16 %v522_v26, %v514_v25  ;;  %v513_v31 = vld [vmem:[%s2056_s5 + $0x10] sm:$0xff] }
   0xe   : > { %s1429_s11 = sshll.u32 %s2061_s22, 6  ;;  %1507 = vmatprep.subr.bf16.mxu0 %v1506_v8  ;;  %v1544_v35 = vpack.c.bf16 %v551_v34, %v543_v33  ;;  %v568_v37 = vld [vmem:[%s2056_s5 + $0x1c8] sm:$0xff]  ;;  %v559_v38 = vld [vmem:[%s2056_s5 + $0x180] sm:$0xff]  ;;  %v530_v33 = vld [vmem:[%s2056_s5 + $0x98] sm:$0xff] }
   0xf   : > { %s246_s14 = scalar_lea.vmem %s2051_s0, %s1429_s11  ;;  %v1546_v39 = vpack.c.bf16 %v568_v37, %v560_v36  ;;  %v567_v40 = vld [vmem:[%s2056_s5 + $0x1c0] sm:$0xff]  ;;  %v516_v0 = vld [vmem:[%s2056_s5 + $0x28] sm:$0xff]  ;;  %v538_v34 = vld [vmem:[%s2056_s5 + $0xd8] sm:$0xff]  ;;  %s251_s7 = scalar_lea.vmem %s2057_s6, %s1429_s11 }
  0x10   : > { %v252_v9 = vld [vmem:[%s246_s14] sm:$0xff]  ;;  %v253_v10 = vld [vmem:[%s246_s14 + $0x8] sm:$0xff]  ;;  %v254_v11 = vld [vmem:[%s246_s14 + $0x10] sm:$0xff]  ;;  %v1548_v41 = vpack.c.bf16 %v567_v40, %v559_v38  ;;  %v1554_v37 = vpack.c.bf16 %v538_v34, %v530_v33 }
  0x11   : > { %1467 = vmatprep.mubr.msk.f32.mxu0 %vm273_vm0, %v252_v9  ;;  %1509 = vmatpush3.bf16.msra.mxu0 %v1506_v8  ;;  %v255_v12 = vld [vmem:[%s246_s14 + $0x18] sm:$0xff]  ;;  %v256_v13 = vld [vmem:[%s246_s14 + $0x20] sm:$0xff]  ;;  %v257_v14 = vld [vmem:[%s246_s14 + $0x28] sm:$0xff] }
  0x12   : > { %v258_v15 = vld [vmem:[%s246_s14 + $0x30] sm:$0xff]  ;;  %v259_v16 = vld [vmem:[%s246_s14 + $0x38] sm:$0xff]  ;;  %1535 = vmatprep.subr.bf16.mxu0 %v1534_v21  ;;  %v1380_v42 = vld [vmem:[%s2053_s2] ss:$0 sm:$0xff] }
  0x13   : > { %v524_v1 = vld [vmem:[%s2056_s5 + $0x68] sm:$0xff]  ;;  %v515_v3 = vld [vmem:[%s2056_s5 + $0x20] sm:$0xff]  ;;  %v529_v38 = vld [vmem:[%s2056_s5 + $0x90] sm:$0xff] }
  0x14   : > { %1468 = vmatmul.mubr.msk.f32.vlgmr.msra.gmra.mrb[0].mxu0 %vm273_vm0, %v253_v10  ;;  %v1566_v2 = vpack.c.bf16 %v524_v1, %v516_v0  ;;  %v523_v4 = vld [vmem:[%s2056_s5 + $0x60] sm:$0xff]  ;;  %v532_v5 = vld [vmem:[%s2056_s5 + $0xa8] sm:$0xff]  ;;  %v541_v0 = vld [vmem:[%s2056_s5 + $0xf0] sm:$0xff] }
  0x15   : > { %1470 = vmatprep.mubr.msk.f32.mxu0 %vm273_vm0, %v254_v11  ;;  %1537 = vmatpush1.bf16.msra.mxu0 %v1536_v23  ;;  %v540_v6 = vld [vmem:[%s2056_s5 + $0xe8] sm:$0xff]  ;;  %v1568_v8 = vpack.c.bf16 %v523_v4, %v515_v3  ;;  %v531_v10 = vld [vmem:[%s2056_s5 + $0xa0] sm:$0xff]  ;;  %v550_v1 = vld [vmem:[%s2056_s5 + $0x138] sm:$0xff] }
  0x16   : > { %1539 = vmatprep.subr.bf16.mxu0 %v1538_v28  ;;  %v404_v7 = vld [vmem:[%s2054_s3 + $0x8] sm:$0xff]  ;;  %v1570_v9 = vpack.c.bf16 %v540_v6, %v532_v5  ;;  %v539_v11 = vld [vmem:[%s2056_s5 + $0xe0] sm:$0xff]  ;;  %v1695_v28 = vmov 0.0   ;;  %v549_v5 = vld [vmem:[%s2056_s5 + $0x130] sm:$0xff] }
  0x17   : > { %v555_v17 = vld [vmem:[%s2056_s5 + $0x160] sm:$0xff]  ;;  %v564_v18 = vld [vmem:[%s2056_s5 + $0x1a8] sm:$0xff]  ;;  %v557_v6 = vld [vmem:[%s2056_s5 + $0x170] sm:$0xff] }
  0x18   : > { %1471 = vmatmul.mubr.msk.f32.gmra.mrb[2].mxu0 %vm273_vm0, %v255_v12  ;;  %v548_v12 = vld [vmem:[%s2056_s5 + $0x128] sm:$0xff]  ;;  %v563_v22 = vld [vmem:[%s2056_s5 + $0x1a0] sm:$0xff] }
  0x19   : > { %1473 = vmatprep.mubr.msk.f32.mxu0 %vm273_vm0, %v256_v13  ;;  %1541 = vmatpush1.bf16.msra.mxu0 %v1540_v29  ;;  %v556_v13 = vld [vmem:[%s2056_s5 + $0x168] sm:$0xff]  ;;  %v571_v23 = vld [vmem:[%s2056_s5 + $0x1e0] sm:$0xff] }
  0x1a   : > { %1543 = vmatprep.subr.bf16.mxu0 %v1542_v32  ;;  %v572_v19 = vld [vmem:[%s2056_s5 + $0x1e8] sm:$0xff]  ;;  %v1580_v24 = vpack.c.bf16 %v571_v23, %v563_v22  ;;  %v986_v29 = vld [vmem:[%s2055_s4] sm:$0xff]  ;;  %v521_v32 = vld [vmem:[%s2056_s5 + $0x50] sm:$0xff] }
  0x1b   : > { %v1578_v21 = vpack.c.bf16 %v572_v19, %v564_v18  ;;  %988 = vxpose.xlu0.b32.start [1/2] (short) (narrow) %v986_v29, 8  ;;  %v987_v30 = vld [vmem:[%s2055_s4 + $0x8] sm:$0xff] }
  0x1c   : > { %1474 = vmatmul.mubr.msk.f32.gmra.mrb[4].mxu0 %vm273_vm0, %v257_v14  ;;  %v1572_v14 = vpack.c.bf16 %v539_v11, %v531_v10  ;;  %v565_v11 = vld [vmem:[%s2056_s5 + $0x1b0] sm:$0xff] }
  0x1d   : > { %1476 = vmatprep.mubr.msk.f32.mxu0 %vm273_vm0, %v258_v15  ;;  %1545 = vmatpush1.bf16.msra.mxu0 %v1544_v35  ;;  %v1574_v15 = vpack.c.bf16 %v556_v13, %v548_v12  ;;  %v1552_v35 = vpack.c.bf16 %v521_v32, %v513_v31  ;;  %v573_v12 = vld [vmem:[%s2056_s5 + $0x1f0] sm:$0xff] }
  0x1e   : > { %1547 = vmatprep.subr.bf16.mxu0 %v1546_v39  ;;  %v537_v39 = vld [vmem:[%s2056_s5 + $0xd0] sm:$0xff]  ;;  %v1596_v13 = vpack.c.bf16 %v573_v12, %v565_v11 }
  0x1f   : > { %989 = vxpose.xlu0.b32.end [2/2] (short) (narrow) %v987_v30, 8 }
  0x20   : > { %1477 = vmatmul.mubr.msk.f32.gmra.mrb[6].mxu0 %vm273_vm0, %v259_v16  ;;  %v547_v16 = vld [vmem:[%s2056_s5 + $0x120] sm:$0xff] }
  0x21   : > { %1549 = vmatpush1.bf16.msra.mxu0 %v1548_v41  ;;  %v1576_v20 = vpack.c.bf16 %v555_v17, %v547_v16  ;;  %646 = vmatprep.mubr.f32.mxu0 %v1695_v28  ;;  %v546_v41 = vld [vmem:[%s2056_s5 + $0x118] sm:$0xff] }
  0x22   : > { %1551 = vmatprep.subr.bf16.mxu0 %v1550_v27 }
  0xe7   : > { %v1469_v43 = vpop.f32.mrb[0].mxu0 }
  0xe8   : > { %v370_v44 = vadd.f32 %v1469_v43, %v1380_v42  ;;  %v364_v45 = vpop.f32.mrb[1].mxu0  ;;  %v1556_v43 = vpack.c.bf16 %v537_v39, %v529_v38 }
  0xe9   : > { %v365_v46 = vadd.f32 %v1380_v42, %v364_v45  ;;  %v545_v45 = vld [vmem:[%s2056_s5 + $0x110] sm:$0xff] }
  0xeb   : > { %v1510_v48 = vpack.c.bf16 %v370_v44, %v365_v46  ;;  %v1472_v49 = vpop.f32.mrb[2].mxu0  ;;  %v553_v46 = vld [vmem:[%s2056_s5 + $0x150] sm:$0xff] }
  0xec   : > { %v380_v50 = vadd.f32 %v1472_v49, %v1380_v42  ;;  %v374_v51 = vpop.f32.mrb[3].mxu0  ;;  %v1560_v49 = vpack.c.bf16 %v553_v46, %v545_v45 }
  0xed   : > { %1512 = vmatprep.subr.msk.bf16.mxu1 %vm1830_vm2, %v1510_v48  ;;  %v375_v52 = vadd.f32 %v1380_v42, %v374_v51  ;;  %v561_v51 = vld [vmem:[%s2056_s5 + $0x190] sm:$0xff] }
  0xee   : > { %1515 = vmatpush3.bf16.xpose.msk.msra.mxu1 %vm1830_vm2, %v1510_v48  ;;  %v570_v48 = vld [vmem:[%s2056_s5 + $0x1d8] sm:$0xff] }
  0xef   : > { %v1516_v53 = vpack.c.bf16 %v380_v50, %v375_v52  ;;  %v1475_v54 = vpop.f32.mrb[4].mxu0  ;;  %v1562_v50 = vpack.c.bf16 %v570_v48, %v562_v47  ;;  %v569_v52 = vld [vmem:[%s2056_s5 + $0x1d0] sm:$0xff] }
  0xf0   : > { %v390_v55 = vadd.f32 %v1475_v54, %v1380_v42  ;;  %v384_v56 = vpop.f32.mrb[5].mxu0  ;;  %v526_v54 = vld [vmem:[%s2056_s5 + $0x78] sm:$0xff] }
  0xf1   : > { %1518 = vmatprep.subr.msk.bf16.mxu1 %vm1830_vm2, %v1516_v53  ;;  %v385_v57 = vadd.f32 %v1380_v42, %v384_v56 }
  0xf3   : > { %v1522_v58 = vpack.c.bf16 %v390_v55, %v385_v57  ;;  %v1478_v59 = vpop.f32.mrb[6].mxu0  ;;  %v1564_v55 = vpack.c.bf16 %v569_v52, %v561_v51  ;;  %v517_v57 = vld [vmem:[%s2056_s5 + $0x30] sm:$0xff] }
  0xf4   : > { %v400_v60 = vadd.f32 %v1478_v59, %v1380_v42  ;;  %v394_v61 = vpop.f32.mrb[7].mxu0  ;;  %v534_v59 = vld [vmem:[%s2056_s5 + $0xb8] sm:$0xff] }
  0xf5   : > { %v395_v62 = vadd.f32 %v1380_v42, %v394_v61  ;;  %v554_v42 = vld [vmem:[%s2056_s5 + $0x158] sm:$0xff] }
  0xf6   : > { %1521 = vmatpush3.bf16.xpose.msk.msra.mxu1 %vm1830_vm2, %v1516_v53  ;;  %v1558_v44 = vpack.c.bf16 %v554_v42, %v546_v41  ;;  %v518_v53 = vld [vmem:[%s2056_s5 + $0x38] sm:$0xff] }
  0xf7   : > { %1524 = vmatprep.subr.msk.bf16.mxu1 %vm1830_vm2, %v1522_v58  ;;  %v1528_v63 = vpack.c.bf16 %v400_v60, %v395_v62  ;;  %v1582_v56 = vpack.c.bf16 %v526_v54, %v518_v53  ;;  %v542_v60 = vld [vmem:[%s2056_s5 + $0xf8] sm:$0xff] }
  0xf8   : > { %v1586_v62 = vpack.c.bf16 %v542_v60, %v534_v59 }
  0xfe   : > { %1527 = vmatpush3.bf16.xpose.msk.msra.mxu1 %vm1830_vm2, %v1522_v58  ;;  %v525_v58 = vld [vmem:[%s2056_s5 + $0x70] sm:$0xff] }
  0xff   : > { %1530 = vmatprep.subr.msk.bf16.mxu1 %vm1830_vm2, %v1528_v63  ;;  %v1584_v61 = vpack.c.bf16 %v525_v58, %v517_v57 }
 0x106   : > { %1533 = vmatpush3.bf16.xpose.msk.msra.mxu1 %vm1830_vm2, %v1528_v63  ;;  %v533_v63 = vld [vmem:[%s2056_s5 + $0xb0] sm:$0xff] }
 0x107   : > { %1567 = vmatprep.subr.bf16.mxu1 %v1566_v2  ;;  %v558_v2 = vld [vmem:[%s2056_s5 + $0x178] sm:$0xff]  ;;  %v1588_v3 = vpack.c.bf16 %v541_v0, %v533_v63 }
 0x108   : > { %v1590_v4 = vpack.c.bf16 %v558_v2, %v550_v1 }
 0x10d   : > { %1496 = vmatmul.mubr.msk.f32.vlgmr.msra.gmra.mrb[0].mxu1 %vm405_vm1, %v404_v7  ;;  %v566_v7 = vld [vmem:[%s2056_s5 + $0x1b8] sm:$0xff] }
 0x10e   : > { %1569 = vmatpush1.bf16.msra.mxu1 %v1568_v8  ;;  %800 = vmatprep.mubr.f32.mxu1 %v1695_v28  ;;  %v574_v8 = vld [vmem:[%s2056_s5 + $0x1f8] sm:$0xff] }
 0x10f   : > { %1571 = vmatprep.subr.bf16.mxu1 %v1570_v9  ;;  %v1592_v9 = vpack.c.bf16 %v557_v6, %v549_v5  ;;  %v1594_v10 = vpack.c.bf16 %v574_v8, %v566_v7 }
 0x112   : > { %1573 = vmatpush1.bf16.msra.mxu1 %v1572_v14 }
 0x113   : > { %1575 = vmatprep.subr.bf16.mxu1 %v1574_v15 }
 0x116   : > { %1577 = vmatpush1.bf16.msra.mxu1 %v1576_v20 }
 0x117   : > { %1579 = vmatprep.subr.bf16.mxu1 %v1578_v21 }
 0x11a   : > { %1581 = vmatpush1.bf16.msra.mxu1 %v1580_v24 }
 0x1e0   : > { %v1928_v36 = vpop.f32.mrb[0].mxu1 }
 0x1e1   : > { %v1936_v40 = vpop.f32.mrb[1].mxu1 }
 0x1e2   : > { %1399 = vmatmul.mubr.msk.f32.vlgmr.msra.gmra.mrb[8].mxu0 %vm575_vm3, %v1936_v40  ;;  %1403 = vmatmul.mubr.msk.f32.vlgmr.msra.gmra.mrb[2].mxu1 %vm575_vm3, %v1936_v40 }
 0x1e3   : > { %1553 = vmatpush1.bf16.msra.mxu0 %v1552_v35  ;;  %652 = vmatprep.mubr.f32.mxu0 %v1695_v28 }
 0x1e4   : > { %1555 = vmatprep.subr.bf16.mxu0 %v1554_v37  ;;  %806 = vmatprep.mubr.f32.mxu1 %v1695_v28 }
 0x1e6   : > { %1400 = vmatmul.mubr.msk.f32.gmra.mrb[10].mxu0 %vm575_vm3, %v1928_v36  ;;  %1404 = vmatmul.mubr.msk.f32.gmra.mrb[4].mxu1 %vm575_vm3, %v1928_v36 }
 0x1e7   : > { %1557 = vmatpush1.bf16.msra.mxu0 %v1556_v43  ;;  %723 = vmatprep.mubr.f32.mxu0 %v1695_v28 }
 0x1e8   : > { %1559 = vmatprep.subr.bf16.mxu0 %v1558_v44  ;;  %1088 = vmatprep.mubr.f32.mxu1 %v1695_v28 }
 0x1eb   : > { %1561 = vmatpush1.bf16.msra.mxu0 %v1560_v49 }
 0x1ec   : > { %1563 = vmatprep.subr.bf16.mxu0 %v1562_v50 }
 0x1ef   : > { %1565 = vmatpush1.bf16.msra.mxu0 %v1564_v55 }
 0x1f0   : > { %1583 = vmatprep.subr.bf16.mxu0 %v1582_v56 }
 0x1f2   : > { %1401 = vmatmul.mubr.msk.f32.vlgmr.msra.gmra.mrb[12].mxu0 %vm575_vm3, %v1936_v40 }
 0x1f3   : > { %1585 = vmatpush1.bf16.msra.mxu0 %v1584_v61  ;;  %729 = vmatprep.mubr.f32.mxu0 %v1695_v28 }
 0x1f4   : > { %1587 = vmatprep.subr.bf16.mxu0 %v1586_v62 }
 0x1f6   : > { %1402 = vmatmul.mubr.msk.f32.gmra.mrb[14].mxu0 %vm575_vm3, %v1928_v36 }
 0x1f7   : > { %1589 = vmatpush1.bf16.msra.mxu0 %v1588_v3  ;;  %877 = vmatprep.mubr.f32.mxu0 %v1695_v28 }
 0x1f8   : > { %1591 = vmatprep.subr.bf16.mxu0 %v1590_v4 }
 0x1fb   : > { %1593 = vmatpush1.bf16.msra.mxu0 %v1592_v9 }
 0x1fc   : > { %1595 = vmatprep.subr.bf16.mxu0 %v1594_v10 }
 0x1ff   : > { %1597 = vmatpush1.bf16.msra.mxu0 %v1596_v13  ;;  %v1004_v13 = vpop.trf.xlu0 }
 0x202   : > { %1405 = vmatmul.mubr.msk.f32.vlgmr.msra.gmra.mrb[16].mxu0 %vm575_vm3, %v1936_v40 }
 0x203   : > { %883 = vmatprep.mubr.f32.mxu0 %v1695_v28 }
 0x206   : > { %1406 = vmatmul.mubr.msk.f32.gmra.mrb[18].mxu0 %vm575_vm3, %v1928_v36 }
 0x207   : > { %1301 = vmatprep.mubr.f32.mxu0 %v1695_v28 }
 0x2b5   : > { %v648_v14 = vpop.f32.mrb[8].mxu0  ;;  %v802_v15 = vpop.f32.mrb[2].mxu1 }
 0x2b6   : > { %v1407_v16 = vmul.f32 -1.442695, %v648_v14  ;;  %v1411_v17 = vmul.f32 -1.442695, %v802_v15  ;;  %v650_v18 = vpop.f32.mrb[9].mxu0  ;;  %v804_v19 = vpop.f32.mrb[3].mxu1 }
 0x2b7   : > { %v1408_v20 = vmul.f32 -1.442695, %v650_v18  ;;  %v1412_v21 = vmul.f32 -1.442695, %v804_v19 }
 0x2b8   : > { %1623 = vpow2.f32 %v1407_v16 }
 0x2b9   : > { %1625 = vpow2.f32 %v1411_v17  ;;  %v654_v22 = vpop.f32.mrb[10].mxu0  ;;  %v808_v23 = vpop.f32.mrb[4].mxu1 }
 0x2ba   : > { %1627 = vpow2.f32 %v1408_v20  ;;  %v1415_v24 = vmul.f32 -1.442695, %v654_v22  ;;  %v1419_v25 = vmul.f32 -1.442695, %v808_v23  ;;  %v656_v26 = vpop.f32.mrb[11].mxu0  ;;  %v810_v27 = vpop.f32.mrb[5].mxu1 }
 0x2bb   : > { %1629 = vpow2.f32 %v1412_v21  ;;  %v1416_v29 = vmul.f32 -1.442695, %v656_v26  ;;  %v1420_v30 = vmul.f32 -1.442695, %v810_v27 }
 0x2bc   : > { %1631 = vpow2.f32 %v1415_v24 }
 0x2bd   : > { %1633 = vpow2.f32 %v1419_v25 }
 0x2be   : > { %1635 = vpow2.f32 %v1416_v29 }
 0x2bf   : > { %1637 = vpow2.f32 %v1420_v30 }
 0x2c2   : > { %v1624_v31 = vpop.eup %1623 }
 0x2c3   : > { %v1626_v32 = vpop.eup %1625  ;;  %v938_v33 = vadd.f32 1.0, %v1624_v31 }
 0x2c4   : > { %v1628_v34 = vpop.eup %1627  ;;  %v942_v35 = vadd.f32 1.0, %v1626_v32 }
 0x2c5   : > { %v1630_v36 = vpop.eup %1629  ;;  %1639 = vrcp.f32 %v938_v33  ;;  %v939_v37 = vadd.f32 1.0, %v1628_v34  ;;  %v725_v38 = vpop.f32.mrb[12].mxu0 }
 0x2c6   : > { %v1632_v39 = vpop.eup %1631  ;;  %1641 = vrcp.f32 %v942_v35  ;;  %v943_v40 = vadd.f32 1.0, %v1630_v36  ;;  %v727_v41 = vpop.f32.mrb[13].mxu0  ;;  %v1409_v48 = vmul.f32 -1.442695, %v725_v38 }
 0x2c7   : > { %v1634_v42 = vpop.eup %1633  ;;  %1643 = vrcp.f32 %v939_v37  ;;  %v946_v43 = vadd.f32 1.0, %v1632_v39  ;;  %v1410_v51 = vmul.f32 -1.442695, %v727_v41 }
 0x2c8   : > { %v1636_v44 = vpop.eup %1635  ;;  %1645 = vrcp.f32 %v943_v40  ;;  %v950_v45 = vadd.f32 1.0, %v1634_v42 }
 0x2c9   : > { %v1638_v46 = vpop.eup %1637  ;;  %1647 = vrcp.f32 %v946_v43  ;;  %v947_v47 = vadd.f32 1.0, %v1636_v44  ;;  %v731_v49 = vpop.f32.mrb[14].mxu0 }
 0x2ca   : > { %1649 = vrcp.f32 %v950_v45  ;;  %v951_v50 = vadd.f32 1.0, %v1638_v46  ;;  %v733_v52 = vpop.f32.mrb[15].mxu0  ;;  %v1417_v53 = vmul.f32 -1.442695, %v731_v49 }
 0x2cb   : > { %1651 = vrcp.f32 %v947_v47  ;;  %v1418_v54 = vmul.f32 -1.442695, %v733_v52 }
 0x2cc   : > { %1653 = vrcp.f32 %v951_v50 }
 0x2cd   : > { %1655 = vpow2.f32 %v1409_v48 }
 0x2ce   : > { %1657 = vpow2.f32 %v1410_v51 }
 0x2cf   : > { %v1640_v55 = vpop.eup %1639  ;;  %1659 = vpow2.f32 %v1417_v53 }
 0x2d0   : > { %v2034_v56 = vpop.eup %1641  ;;  %1661 = vpow2.f32 %v1418_v54 }
 0x2d1   : > { %v1644_v57 = vpop.eup %1643 }
 0x2d2   : > { %v1646_v58 = vpop.eup %1645 }
 0x2d3   : > { %v1648_v59 = vpop.eup %1647 }
 0x2d4   : > { %v1650_v60 = vpop.eup %1649  ;;  %v1600_v61 = vpack.c.bf16 %v1648_v59, %v1640_v55 }
 0x2d5   : > { %v1652_v62 = vpop.eup %1651  ;;  %v879_v63 = vpop.f32.mrb[16].mxu0  ;;  %v1608_v0 = vpack.c.bf16 %v1650_v60, %v2034_v56 }
 0x2d6   : > { %v1654_v1 = vpop.eup %1653  ;;  %v1413_v2 = vmul.f32 -1.442695, %v879_v63  ;;  %v881_v3 = vpop.f32.mrb[17].mxu0  ;;  %v1598_v4 = vpack.c.bf16 %v1652_v62, %v1644_v57 }
 0x2d7   : > { %v1656_v5 = vpop.eup %1655  ;;  %v1414_v6 = vmul.f32 -1.442695, %v881_v3  ;;  %v1606_v7 = vpack.c.bf16 %v1654_v1, %v1646_v58 }
 0x2d8   : > { %v1658_v8 = vpop.eup %1657  ;;  %v940_v9 = vadd.f32 1.0, %v1656_v5  ;;  %1663 = vpow2.f32 %v1413_v2  ;;  %1599 = vmatprep.subr.bf16.mxu1 %v1598_v4 }
 0x2d9   : > { %v1660_v10 = vpop.eup %1659  ;;  %v941_v11 = vadd.f32 1.0, %v1658_v8  ;;  %1665 = vpow2.f32 %v1414_v6  ;;  %v885_v12 = vpop.f32.mrb[18].mxu0  ;;  %1601 = vmatpush1.bf16.msra.mxu1 %v1600_v61 }
 0x2da   : > { %v1662_v14 = vpop.eup %1661  ;;  %1667 = vrcp.f32 %v940_v9  ;;  %v948_v15 = vadd.f32 1.0, %v1660_v10  ;;  %v1421_v16 = vmul.f32 -1.442695, %v885_v12  ;;  %v887_v17 = vpop.f32.mrb[19].mxu0 }
 0x2db   : > { %1669 = vrcp.f32 %v941_v11  ;;  %v949_v18 = vadd.f32 1.0, %v1662_v14  ;;  %v1422_v19 = vmul.f32 -1.442695, %v887_v17 }
 0x2dc   : > { %1671 = vrcp.f32 %v948_v15  ;;  %1423 = vmatmul.mubr.msk.f32.vlgmr.msra.gmra.mrb[6].mxu1 %vm1020_vm4, %v1004_v13 }
 0x2dd   : > { %1673 = vrcp.f32 %v949_v18  ;;  %1159 = vmatprep.mubr.f32.mxu1 %v1695_v28 }
 0x2de   : > { %1675 = vpow2.f32 %v1421_v16 }
 0x2df   : > { %1677 = vpow2.f32 %v1422_v19 }
 0x2e2   : > { %v1664_v20 = vpop.eup %1663 }
 0x2e3   : > { %v1666_v21 = vpop.eup %1665  ;;  %v944_v24 = vadd.f32 1.0, %v1664_v20 }
 0x2e4   : > { %v1668_v22 = vpop.eup %1667  ;;  %v945_v26 = vadd.f32 1.0, %v1666_v21 }
 0x2e5   : > { %v1670_v23 = vpop.eup %1669  ;;  %1679 = vrcp.f32 %v944_v24 }
 0x2e6   : > { %v1672_v25 = vpop.eup %1671  ;;  %1681 = vrcp.f32 %v945_v26 }
 0x2e7   : > { %v1674_v27 = vpop.eup %1673  ;;  %v1604_v29 = vpack.c.bf16 %v1672_v25, %v1668_v22 }
 0x2e8   : > { %v1676_v30 = vpop.eup %1675  ;;  %v1602_v31 = vpack.c.bf16 %v1674_v27, %v1670_v23 }
 0x2e9   : > { %v1678_v32 = vpop.eup %1677  ;;  %v952_v33 = vadd.f32 1.0, %v1676_v30 }
 0x2ea   : > { %v953_v34 = vadd.f32 1.0, %v1678_v32  ;;  %1603 = vmatprep.subr.bf16.mxu1 %v1602_v31 }
 0x2eb   : > { %1683 = vrcp.f32 %v952_v33  ;;  %1605 = vmatpush1.bf16.msra.mxu1 %v1604_v29 }
 0x2ec   : > { %1685 = vrcp.f32 %v953_v34  ;;  %1607 = vmatprep.subr.bf16.mxu1 %v1606_v7 }
 0x2ee   : > { %1424 = vmatmul.mubr.msk.f32.vlgmr.msra.gmra.mrb[8].mxu1 %vm1020_vm4, %v1004_v13 }
 0x2ef   : > { %1609 = vmatpush1.bf16.msra.mxu1 %v1608_v0  ;;  %1230 = vmatprep.mubr.f32.mxu1 %v1695_v28  ;;  %v1680_v35 = vpop.eup %1679 }
 0x2f0   : > { %v1682_v36 = vpop.eup %1681 }
 0x2f2   : > { %1425 = vmatmul.mubr.msk.f32.vlgmr.msra.gmra.mrb[10].mxu1 %vm1020_vm4, %v1004_v13 }
 0x2f5   : > { %v1684_v37 = vpop.eup %1683 }
 0x2f6   : > { %v1686_v38 = vpop.eup %1685  ;;  %v1612_v39 = vpack.c.bf16 %v1684_v37, %v1680_v35 }
 0x2f7   : > { %v1610_v40 = vpack.c.bf16 %v1686_v38, %v1682_v36 }
 0x2f9   : > { %1611 = vmatprep.subr.bf16.mxu0 %v1610_v40 }
 0x2fa   : > { %1613 = vmatpush1.bf16.msra.mxu0 %v1612_v39 }
 0x2fd   : > { %1426 = vmatmul.mubr.msk.f32.vlgmr.msra.gmra.mrb[20].mxu0 %vm1020_vm4, %v1004_v13 }
 0x3af   : > { %v1090_v41 = vpop.f32.mrb[6].mxu1 }
 0x3b0   : > { %1308 = vst [vmem:[%s251_s7] sm:$0x3f] %v1090_v41  ;;  %v1092_v28 = vpop.f32.mrb[7].mxu1 }
 0x3b1   : > { %1309 = vst [vmem:[%s251_s7 + $0x8] sm:$0x3f] %v1092_v28 }
 0x3c1   : > { %v1161_v42 = vpop.f32.mrb[8].mxu1 }
 0x3c2   : > { %1310 = vst [vmem:[%s251_s7 + $0x10] sm:$0x3f] %v1161_v42  ;;  %v1163_v43 = vpop.f32.mrb[9].mxu1 }
 0x3c3   : > { %1311 = vst [vmem:[%s251_s7 + $0x18] sm:$0x3f] %v1163_v43 }
 0x3c5   : > { %v1232_v44 = vpop.f32.mrb[10].mxu1 }
 0x3c6   : > { %1312 = vst [vmem:[%s251_s7 + $0x20] sm:$0x3f] %v1232_v44  ;;  %v1234_v45 = vpop.f32.mrb[11].mxu1 }
 0x3c7   : > { %1313 = vst [vmem:[%s251_s7 + $0x28] sm:$0x3f] %v1234_v45 }
 0x3d0   : > { %v1303_v46 = vpop.f32.mrb[20].mxu0 }
 0x3d1   : > { %1314 = vst [vmem:[%s251_s7 + $0x30] sm:$0x3f] %v1303_v46  ;;  %v1305_v47 = vpop.f32.mrb[21].mxu0 }
 0x3d2   : > { %1315 = vst [vmem:[%s251_s7 + $0x38] sm:$0x3f] %v1305_v47 }
 0x3d3 PF: > { %s16_s21 = sadd.s32 1, %s1693_s21  }
 0x3d4   : > { %p13_p4 = scmp.ge.s32.totalorder %s16_s21, 4  }
 0x3d6   :  { %15 = sbr.rel (!%p13_p4) target bundleno = 1 (0x1), region = 74 }

</bundles_post_ra>
